<compile_context>
chip_gen: v6e
topology: v6e:2x2x1
jax: 0.10.0
libtpu: 0.0.40
codegen_flags: <defaults>
</compile_context>

<pallas_src>
import functools

import jax
import jax.numpy as jnp
from jax.experimental import pallas as pl
from jax.experimental.pallas import tpu as pltpu


def _encoder_kernel(x_ref, w_ref, b_ref, o_ref, *, compute_dtype):
    # MXU matmul in compute_dtype (bf16 recommended on v6e/v7x), f32
    # accumulation, f32 bias + ReLU epilogue, cast only at the final store.
    x = x_ref[...].astype(compute_dtype)                      # [tm, in_dim]
    w = w_ref[...].astype(compute_dtype)                      # [in_dim, tn]
    acc = jnp.dot(x, w, preferred_element_type=jnp.float32)   # [tm, tn] f32
    y = acc + b_ref[...].astype(jnp.float32)                  # bias in f32
    o_ref[...] = jnp.maximum(y, 0.0).astype(o_ref.dtype)


def prepare_encoder_params(w, b, *, param_dtype=jnp.bfloat16):
    """One-time (init-time) parameter prep.

    Casting weights/bias to bf16 once in HBM halves per-call weight DMA
    traffic and the resident weight-tile VMEM footprint; the kernel still
    accumulates in f32.
    """
    return w.astype(param_dtype), b.astype(param_dtype)


def _vmem_bytes(tm, tn, in_dim, x_bytes, w_bytes, o_bytes):
    # Double-buffered x/w/bias/out tiles + an f32 accumulator intermediate.
    return (2 * (tm * in_dim * x_bytes
                 + in_dim * tn * w_bytes
                 + tn * 4
                 + tm * tn * o_bytes)
            + tm * tn * 4)


def encoder_forward(x, w, b, *, tm=512, tn=2048,
                    compute_dtype=jnp.bfloat16, out_dtype=None):
    """Encode [N, in_dim] -> [N, out_dim] = relu(x @ w + b) with Pallas.

    Memory-bound regime: tiling/DMA efficiency dominates, not MXU util.
    """
    n, in_dim = x.shape
    in_dim_w, out_dim = w.shape
    assert in_dim == in_dim_w, (in_dim, in_dim_w)
    out_dtype = x.dtype if out_dtype is None else jnp.dtype(out_dtype)

    x_bytes = jnp.dtype(x.dtype).itemsize
    w_bytes = jnp.dtype(w.dtype).itemsize
    o_bytes = jnp.dtype(out_dtype).itemsize

    # Clamp tiles to the problem.  A clamped tile equals the full array dim,
    # so the (8,128) block constraint is satisfied even for ragged sizes;
    # larger problems keep sublane/lane-aligned default tiles and Pallas
    # masks the edge tiles.
    tm = n if n <= tm else tm
    tn = out_dim if out_dim <= tn else tn

    # VMEM budget guard: 40 MiB tile budget (fits v7x's 64 MiB physical with
    # headroom), shrink tn first (weight tile scales with in_dim), then tm.
    budget = 40 << 20
    while (_vmem_bytes(tm, tn, in_dim, x_bytes, w_bytes, o_bytes) > budget
           and tn >= 256 and tn % 256 == 0):
        tn //= 2
    while (_vmem_bytes(tm, tn, in_dim, x_bytes, w_bytes, o_bytes) > budget
           and tm >= 16 and tm % 16 == 0):
        tm //= 2

    b2 = b.reshape(1, out_dim)   # lane-dense (1, out_dim) bias row

    # Grid: (out_dim tiles, row tiles).  Row axis is innermost, so w/bias
    # blocks (index (0, j)) stay VMEM-resident across the row sweep; x (the
    # cheap operand) is refetched per out_dim tile.  Leading out_dim axis is
    # "parallel" so v7x megacore splits it across both TensorCores.
    grid = (pl.cdiv(out_dim, tn), pl.cdiv(n, tm))

    cost = pl.CostEstimate(
        flops=2 * n * in_dim * out_dim,
        transcendentals=0,
        bytes_accessed=(n * in_dim * x_bytes
                        + in_dim * out_dim * w_bytes
                        + out_dim * w_bytes
                        + n * out_dim * o_bytes),
    )

    return pl.pallas_call(
        functools.partial(_encoder_kernel, compute_dtype=compute_dtype),
        out_shape=jax.ShapeDtypeStruct((n, out_dim), out_dtype),
        grid=grid,
        in_specs=[
            # x: new row tile per inner step i, constant along j.
            pl.BlockSpec((tm, in_dim), lambda j, i: (i, 0)),
            # w: constant along the inner row axis -> VMEM-resident.
            pl.BlockSpec((in_dim, tn), lambda j, i: (0, j)),
            # bias: one lane-dense (1, tn) block per out_dim tile.
            pl.BlockSpec((1, tn), lambda j, i: (0, j)),
        ],
        out_specs=pl.BlockSpec((tm, tn), lambda j, i: (i, j)),
        compiler_params=pltpu.CompilerParams(
            dimension_semantics=("parallel", "parallel"),
            vmem_limit_bytes=48 << 20,
        ),
        cost_estimate=cost,
    )(x, w, b2)


if __name__ == "__main__":
    # Small shapes consistent with the module's contract:
    # low-dim input [N, in_dim] -> high-dim feature [N, out_dim].
    N, IN_DIM, OUT_DIM = 8, 16, 128

    key = jax.random.PRNGKey(0)
    kx, kw, kb = jax.random.split(key, 3)

    x = jax.random.normal(kx, (N, IN_DIM), dtype=jnp.float32)
    # Deterministic parameter init (synthetic, no checkpoint load).
    w_f32 = jax.random.normal(kw, (IN_DIM, OUT_DIM), dtype=jnp.float32) * 0.02
    b_f32 = jax.random.normal(kb, (OUT_DIM,), dtype=jnp.float32) * 0.02

    # Pure-JAX reference of the same semantics (f32 everywhere).
    ref = jnp.maximum(x @ w_f32 + b_f32[None, :], 0.0)

    # 1) f32 params + f32 compute: strict check.
    out_f32 = encoder_forward(x, w_f32, b_f32, compute_dtype=jnp.float32)
    out_f32 = jax.block_until_ready(out_f32)
    assert out_f32.shape == (N, OUT_DIM)
    assert jnp.allclose(out_f32, ref, atol=1e-5, rtol=1e-5)

    # 2) Init-time bf16 params + bf16 MXU with f32 accumulation, f32 output:
    #    loose tolerance accounts for bf16 input/weight rounding.
    w_bf16, b_bf16 = prepare_encoder_params(w_f32, b_f32,
                                            param_dtype=jnp.bfloat16)
    out_bf = encoder_forward(x, w_bf16, b_bf16, compute_dtype=jnp.bfloat16)
    out_bf = jax.block_until_ready(out_bf)
    assert out_bf.shape == (N, OUT_DIM)
    assert jnp.allclose(out_bf, ref, atol=2e-2, rtol=2e-2)

    # 3) Same, with bf16 stores (half the dominant output HBM traffic).
    out_half = encoder_forward(x, w_bf16, b_bf16,
                               compute_dtype=jnp.bfloat16,
                               out_dtype=jnp.bfloat16)
    out_half = jax.block_until_ready(out_half)
    assert out_half.dtype == jnp.bfloat16
    assert jnp.allclose(out_half.astype(jnp.float32), ref,
                        atol=3e-2, rtol=3e-2)

    print("KERNEL_OK")
</pallas_src>

<mosaic_0001>
module attributes {stable_mosaic.version = 11 : i64} {
  func.func @_encoder_kernel(%arg0: i32, %arg1: i32, %arg2: memref<8x16xf32, #tpu.memory_space<vmem>>, %arg3: memref<16x128xf32, #tpu.memory_space<vmem>>, %arg4: memref<1x128xf32, #tpu.memory_space<vmem>>, %arg5: memref<8x128xf32, #tpu.memory_space<vmem>>) attributes {dimension_semantics = [#tpu.dimension_semantics<parallel>, #tpu.dimension_semantics<parallel>], iteration_bounds = array<i64: 1, 1>, scalar_prefetch = 0 : i64, scratch_operands = 0 : i64, tpu.core_type = #tpu.core_type<tc>, window_params = [{transform_indices = @transform_0, window_bounds = array<i64: 8, 16>}, {transform_indices = @transform_1, window_bounds = array<i64: 16, 128>}, {transform_indices = @transform_2, window_bounds = array<i64: 1, 128>}, {transform_indices = @transform_3, window_bounds = array<i64: 8, 128>}]} {
    %c0 = arith.constant 0 : index
    %c0_0 = arith.constant 0 : index
    %0 = vector.load %arg2[%c0, %c0_0] : memref<8x16xf32, #tpu.memory_space<vmem>>, vector<8x16xf32>
    %c0_1 = arith.constant 0 : index
    %c0_2 = arith.constant 0 : index
    %1 = vector.load %arg3[%c0_1, %c0_2] : memref<16x128xf32, #tpu.memory_space<vmem>>, vector<16x128xf32>
    %cst = arith.constant dense<0.000000e+00> : vector<8x128xf32>
    %2 = tpu.matmul %0, %1, %cst {dimension_numbers = #tpu.dot_dimension_numbers<[1], [0], [0], [1], [0, 0, 1, 1], [], []>} : vector<8x16xf32>, vector<16x128xf32>, vector<8x128xf32> -> vector<8x128xf32>
    %c0_3 = arith.constant 0 : index
    %c0_4 = arith.constant 0 : index
    %3 = vector.load %arg4[%c0_3, %c0_4] : memref<1x128xf32, #tpu.memory_space<vmem>>, vector<1x128xf32>
    %4 = vector.broadcast %3 : vector<1x128xf32> to vector<8x128xf32>
    %5 = arith.addf %2, %4 : vector<8x128xf32>
    %cst_5 = arith.constant 0.000000e+00 : f32
    %6 = vector.broadcast %cst_5 : f32 to vector<8x128xf32>
    %7 = arith.maximumf %5, %6 : vector<8x128xf32>
    %c0_6 = arith.constant 0 : index
    %c0_7 = arith.constant 0 : index
    %8 = vector.load %arg5[%c0_6, %c0_7] : memref<8x128xf32, #tpu.memory_space<vmem>>, vector<8x128xf32>
    tpu.vector_store %arg5[%c0_6, %c0_7], %7 {strides = array<i32>} : memref<8x128xf32, #tpu.memory_space<vmem>>, vector<8x128xf32>,
    return
  }
  func.func @transform_0(%arg0: i32, %arg1: i32) -> (i32, i32) {
    %c0_i32 = arith.constant 0 : i32
    %c0_i32_0 = arith.constant 0 : i32
    return %arg1, %c0_i32 : i32, i32
  }
  func.func @transform_1(%arg0: i32, %arg1: i32) -> (i32, i32) {
    %c0_i32 = arith.constant 0 : i32
    %c0_i32_0 = arith.constant 0 : i32
    return %c0_i32, %arg0 : i32, i32
  }
  func.func @transform_2(%arg0: i32, %arg1: i32) -> (i32, i32) {
    %c0_i32 = arith.constant 0 : i32
    %c0_i32_0 = arith.constant 0 : i32
    return %c0_i32, %arg0 : i32, i32
  }
  func.func @transform_3(%arg0: i32, %arg1: i32) -> (i32, i32) {
    %c0_i32 = arith.constant 0 : i32
    return %arg1, %arg0 : i32, i32
  }
}

</mosaic_0001>

<bundles_post_ra>
// kernel: tpu_custom_call.1
= control target key start
LH: loop header
LB: loop body
LE: loop exit
PB: predicated region body
PF: predicated region fallthrough
CT: control target
= control target key end

     0   :  { %8 = vsyncpa [#allocation3], 0  ;;  %s267_s0 = inlined_call_operand.hbm [shape: f32[8,16], index: 0, kind: input, shape index: {}]   ;;  %s268_s1 = inlined_call_operand.hbm [shape: f32[16,128], index: 1, kind: input, shape index: {}]   ;;  %s269_s2 = inlined_call_operand.vmem [shape: f32[1,128], index: 2, kind: input, shape index: {}]   ;;  %s270_s3 = inlined_call_operand.hbm [shape: f32[8,128], index: 3, kind: output, shape index: {}]  }
   0x1   :  { %9 = vsyncpa [#allocation6], 0 }
   0x2   :  { %10 = vsyncpa [#allocation4], 0  ;;  %s228_s12 = smov [#allocation2]   ;;  %s229_s14 = smov [#allocation5]  }
   0x3   :  { %s17_s13 = sshll.u32 %s228_s12, 4  ;;  %s26_s15 = sshll.u32 %s229_s14, 4  ;;  %s18_s13 = int_to_ptr.vmem [resolvable:$true] %s17_s13  ;;  %s27_s15 = int_to_ptr.vmem [resolvable:$true] %s26_s15 }
   0x4   :  { %s170_s16 = scalar_lea.vmem %s18_s13, 128  ;;  %p175_p1 = scmp.lt.s32.totalorder %s18_s13, %s18_s13 }
   0x5   :  { %p171_p0 = scmp.ne.s32.totalorder %s18_s13, %s170_s16  ;;  %p176_p2 = scmp.lt.s32.totalorder %s170_s16, %s170_s16 }
   0x7   :  { %p177_p3 = por %p176_p2, %p175_p1 }
   0x9   :  { %p178_p4 = pnand %p177_p3, %p171_p0 }
   0xb   :  { %181 = shalt.err (!%p178_p4)
}
   0xc   :  { %20 = dma.hbm_to_vmem [thread:$0]  %s267_s0, 128, %s18_s13, [#allocation3]  }
   0xd   :  { %s190_s19 = scalar_lea.vmem %s27_s15, 256  ;;  %p195_p6 = scmp.lt.s32.totalorder %s27_s15, %s27_s15 }
   0xe   :  { %p191_p5 = scmp.ne.s32.totalorder %s27_s15, %s190_s19  ;;  %p196_p7 = scmp.lt.s32.totalorder %s190_s19, %s190_s19 }
  0x10   :  { %p197_p8 = por %p196_p7, %p195_p6 }
  0x12   :  { %p198_p9 = pnand %p197_p8, %p191_p5 }
  0x14   :  { %201 = shalt.err (!%p198_p9)
}
  0x15   :  { %s230_s20 = smov 128   ;;  %s231_s21 = smov 8  }
  0x16   :  { %32 = dma.hbm_to_vmem [thread:$0]  %s268_s1, 256, %s27_s15, [#allocation6], %s230_s20, %s230_s20, %s231_s21  }
  0x17   :  { %222 = dma.done.wait [#allocation3], 128  }
  0x18   :  { %223 = vsyncadd [#allocation3], 4294967168 }
  0x19   :  { %224 = dma.done.wait [#allocation6], 256  }
  0x1a   :  { %225 = vsyncadd [#allocation6], 4294967040  ;;  %v232_v0 = vmov 0.0   ;;  %vm233_vm0 = vmmov 0   ;;  %v43_v1 = vld [vmem:[#allocation5 + $0x8] sm:$0xff]  ;;  %v42_v2 = vld [vmem:[#allocation5] sm:$0xff] }
  0x1b   :  { %148 = vmatprep.subr.mxu0 %v232_v0  ;;  %152 = vmatprep.mubr.msk.f32.mxu0 %vm233_vm0, %v232_v0  ;;  %v41_v3 = vld [vmem:[#allocation2] sm:$0xff]  ;;  %vm51_vm1 = vcmask 130048   ;;  %s234_s1 = smov [#allocation7]  }
  0x1c   :  { %149 = vmatpush3.msra.mxu0 %v43_v1  ;;  %v143_v4 = vld [vmem:[%s269_s2] ss:$0 sm:$0xff]  ;;  %s133_s25 = sshll.u32 %s234_s1, 4  ;;  %s134_s25 = int_to_ptr.vmem [resolvable:$true] %s133_s25 }
  0x1d   :  { %150 = vmatprep.subr.mxu0 %v232_v0  ;;  %s202_s26 = scalar_lea.vmem %s134_s25, 128  ;;  %p207_p11 = scmp.lt.s32.totalorder %s134_s25, %s134_s25 }
  0x1e   :  { %151 = vmatpush3.msra.mxu0 %v42_v2  ;;  %p203_p10 = scmp.ne.s32.totalorder %s134_s25, %s202_s26  ;;  %p208_p12 = scmp.lt.s32.totalorder %s202_s26, %s202_s26 }
  0x1f   :  { %153 = vmatmul.mubr.msk.f32.vlgmr.msra.gmra.mxu0 %vm51_vm1, %v41_v3 }
  0x20   :  { %p209_p13 = por %p208_p12, %p207_p11 }
  0x22   :  { %p210_p0 = pnand %p209_p13, %p203_p10 }
  0xdf   :  { %v121_v5 = vpop.f32.mrf.mxu0 }
  0xe0   :  { %v122_v6 = vadd.f32 %v143_v4, %v121_v5 }
  0xe1   :  { %v154_v7 = vpop.f32.mrf.mxu0 }
  0xe2   :  { %v125_v8 = vmax.f32 %v122_v6, 0.0 }
  0xe4   :  { %126 = vst [vmem:[#allocation7] sm:$0xff] %v125_v8 }
  0xe5   :  { %213 = shalt.err (!%p210_p0)
}
  0xe6   :  { %136 = dma.vmem_to_hbm [thread:$0]  %s134_s25, 128, %s270_s3, [#allocation4]  }
  0xe7   :  { %226 = dma.done.wait [#allocation4], 128  }
  0xe8   :  { %227 = vsyncadd [#allocation4], 4294967168 }
  0xe9   :  { %140 = vsyncpa [#allocation3], 1 }
  0xea   :  { %141 = vsyncpa [#allocation6], 1 }
  0xeb   :  { %142 = vsyncpa [#allocation4], 1 }

</bundles_post_ra>
